<compile_context>
chip_gen: v6e
topology: v6e:2x2x1
jax: 0.10.0
libtpu: 0.0.40
codegen_flags: <defaults>
</compile_context>

<pallas_src>
import jax
import jax.numpy as jnp
from jax.experimental import pallas as pl
from jax.experimental.pallas import tpu as pltpu


def _gcn_kernel(a_ref, x_ref, dcol_ref, o_ref, acc_ref):
    # a_ref:    (tm, tk)  bf16 adjacency tile
    # x_ref:    (tk, Dp)  bf16 row-scaled features tile (d_row * X)
    # dcol_ref: (tm, 1)   f32 row-scale D^{-1/2}
    # o_ref:    (tm, Dp)  f32 output tile (lane-dense, Dp % 128 == 0)
    # acc_ref:  (tm, Dp)  f32 VMEM accumulator
    k = pl.program_id(1)

    @pl.when(k == 0)
    def _():
        acc_ref[...] = jnp.zeros_like(acc_ref)

    acc_ref[...] += jnp.dot(
        a_ref[...], x_ref[...], preferred_element_type=jnp.float32
    )

    @pl.when(k == pl.num_programs(1) - 1)
    def _():
        o_ref[...] = (dcol_ref[...] * acc_ref[...]).astype(o_ref.dtype)


def gcn_spmm_pallas(adj, features, d_inv_sqrt, *, tm=128, tk=128,
                    compute_dtype=jnp.bfloat16):
    """out = diag(d) @ adj @ diag(d) @ features, computed on-TPU in Pallas.

    Computed as  d_col * (A @ (d_row * X))  with a K-tiled f32 accumulator.
    """
    N, D = features.shape
    assert adj.shape == (N, N)

    # Padded extents: rows to a multiple of tm, contraction to a multiple of tk,
    # feature dim to a multiple of 128 (lane-dense output).
    Nr = pl.cdiv(N, tm) * tm
    Nk = pl.cdiv(N, tk) * tk
    Dp = pl.cdiv(D, 128) * 128

    d = d_inv_sqrt.astype(jnp.float32)

    # Pre-scale features by d_row once (O(N*D)); pad; cast to MXU dtype.
    x_scaled = d[:, None] * features.astype(jnp.float32)
    x_scaled = jnp.pad(x_scaled, ((0, Nk - N), (0, Dp - D)))
    x_scaled = x_scaled.astype(compute_dtype)

    # Adjacency: 0/1 values are exact in bf16.  Pad rows & contraction cols.
    a = jnp.pad(adj.astype(compute_dtype), ((0, Nr - N), (0, Nk - N)))

    # Row-scale applied post-matmul on the (tm, Dp) tile; stays f32.
    d_col = jnp.pad(d, (0, Nr - N)).reshape(Nr, 1)

    grid = (Nr // tm, Nk // tk)  # (rows, K) — K last, rows parallel.

    out = pl.pallas_call(
        _gcn_kernel,
        out_shape=jax.ShapeDtypeStruct((Nr, Dp), jnp.float32),
        grid_spec=pltpu.PrefetchScalarGridSpec(
            num_scalar_prefetch=0,
            grid=grid,
            in_specs=[
                pl.BlockSpec((tm, tk), lambda i, k: (i, k)),   # adjacency tile
                pl.BlockSpec((tk, Dp), lambda i, k: (k, 0)),   # scaled features tile
                pl.BlockSpec((tm, 1), lambda i, k: (i, 0)),    # d_col row tile
            ],
            out_specs=pl.BlockSpec((tm, Dp), lambda i, k: (i, 0)),
            scratch_shapes=[pltpu.VMEM((tm, Dp), jnp.float32)],
        ),
        compiler_params=pltpu.CompilerParams(
            dimension_semantics=("parallel", "arbitrary"),
        ),
    )(a, x_scaled, d_col)

    return out[:N, :D]


def gcn_layer_forward(features, Mat, index):
    """JAX equivalent of GCN_layer.forward(features, Mat, index).

    Note: as in the PyTorch module with a full-graph spmm, `index` is expected
    to address all rows of the spmm output (e.g. a permutation of the nodes);
    rows not listed in `index` keep their original features.
    """
    Mat = Mat.astype(jnp.float32)
    features = features.astype(jnp.float32)

    # normalize_adj: symmetric degree normalization (cheap glue in plain JAX)
    rowsum = jnp.sum(Mat, axis=1)
    rowsum = jnp.maximum(rowsum, 1e-12)
    d_inv_sqrt = jnp.power(rowsum, -0.5)
    d_inv_sqrt = jnp.where(jnp.isinf(d_inv_sqrt), 0.0, d_inv_sqrt)

    # hot path: D^{-1/2} A D^{-1/2} X on the MXU via Pallas
    out_features = gcn_spmm_pallas(Mat, features, d_inv_sqrt)

    # new_features[index] = out ; remaining rows keep original features
    new_features = features.at[index].set(out_features)
    return new_features


if __name__ == "__main__":
    key = jax.random.PRNGKey(0)
    k1, k2, k3 = jax.random.split(key, 3)

    # Small, deliberately non-tile-aligned node count to exercise the padding
    # path; D=64 exercises the lane-dense (pad-to-128) output packing.
    N, D = 300, 64

    features = jax.random.normal(k1, (N, D), dtype=jnp.float32)
    # symmetric 0/1 adjacency with self-loops
    rand = jax.random.uniform(k2, (N, N))
    adj = (rand < 0.05).astype(jnp.float32)
    adj = jnp.maximum(adj, adj.T)
    adj = jnp.maximum(adj, jnp.eye(N, dtype=jnp.float32))
    # `index` addresses every spmm output row -> permutation of the nodes
    index = jax.random.permutation(k3, N)

    out = gcn_layer_forward(features, adj, index)
    jax.block_until_ready(out)

    # Pure-JAX reference with the same bf16 operand quantization (the MXU
    # accumulates in f32, so results should agree tightly).
    rowsum = jnp.maximum(adj.sum(1), 1e-12)
    d = jnp.power(rowsum, -0.5)
    d = jnp.where(jnp.isinf(d), 0.0, d)
    a_bf = adj.astype(jnp.bfloat16).astype(jnp.float32)
    x_bf = (d[:, None] * features).astype(jnp.bfloat16).astype(jnp.float32)
    ref_spmm = d[:, None] * (a_bf @ x_bf)
    ref = features.at[index].set(ref_spmm)
    assert jnp.allclose(out, ref, atol=2e-3, rtol=2e-3), "mismatch vs reference"

    # Loose sanity check against the fully-f32 reference (bf16 operand rounding).
    ref_f32 = features.at[index].set(d[:, None] * (adj @ (d[:, None] * features)))
    assert jnp.allclose(out, ref_f32, atol=3e-2, rtol=3e-2), "mismatch vs f32 reference"

    print("KERNEL_OK")
</pallas_src>

<mosaic_0001>
module attributes {stable_mosaic.version = 11 : i64} {
  func.func @_gcn_kernel(%arg0: i32, %arg1: i32, %arg2: memref<128x128xbf16, #tpu.memory_space<vmem>>, %arg3: memref<128x128xbf16, #tpu.memory_space<vmem>>, %arg4: memref<128x1xf32, #tpu.memory_space<vmem>>, %arg5: memref<128x128xf32, #tpu.memory_space<vmem>>, %arg6: memref<128x128xf32, #tpu.memory_space<vmem>>) attributes {dimension_semantics = [#tpu.dimension_semantics<parallel>, #tpu.dimension_semantics<arbitrary>], iteration_bounds = array<i64: 3, 3>, scalar_prefetch = 0 : i64, scratch_operands = 1 : i64, tpu.core_type = #tpu.core_type<tc>, window_params = [{transform_indices = @transform_0, window_bounds = array<i64: 128, 128>}, {transform_indices = @transform_1, window_bounds = array<i64: 128, 128>}, {transform_indices = @transform_2, window_bounds = array<i64: 128, 1>}, {transform_indices = @transform_3, window_bounds = array<i64: 128, 128>}]} {
    %c0_i32 = arith.constant 0 : i32
    %0 = arith.cmpi eq, %arg1, %c0_i32 : i32
    %1 = arith.extui %0 : i1 to i32
    %c0_i32_0 = arith.constant 0 : i32
    %2 = arith.cmpi ne, %1, %c0_i32_0 : i32
    scf.if %2 {
      %cst_9 = arith.constant 0.000000e+00 : f32
      %12 = vector.broadcast %cst_9 : f32 to vector<128x128xf32>
      %c0_10 = arith.constant 0 : index
      %c0_11 = arith.constant 0 : index
      %13 = vector.load %arg6[%c0_10, %c0_11] : memref<128x128xf32, #tpu.memory_space<vmem>>, vector<128x128xf32>
      tpu.vector_store %arg6[%c0_10, %c0_11], %12 {strides = array<i32>} : memref<128x128xf32, #tpu.memory_space<vmem>>, vector<128x128xf32>,
    } else {
    }
    %c0 = arith.constant 0 : index
    %c0_1 = arith.constant 0 : index
    %3 = vector.load %arg6[%c0, %c0_1] : memref<128x128xf32, #tpu.memory_space<vmem>>, vector<128x128xf32>
    %c0_2 = arith.constant 0 : index
    %c0_3 = arith.constant 0 : index
    %4 = vector.load %arg2[%c0_2, %c0_3] : memref<128x128xbf16, #tpu.memory_space<vmem>>, vector<128x128xbf16>
    %c0_4 = arith.constant 0 : index
    %c0_5 = arith.constant 0 : index
    %5 = vector.load %arg3[%c0_4, %c0_5] : memref<128x128xbf16, #tpu.memory_space<vmem>>, vector<128x128xbf16>
    %cst = arith.constant dense<0.000000e+00> : vector<128x128xf32>
    %6 = tpu.matmul %4, %5, %cst {dimension_numbers = #tpu.dot_dimension_numbers<[1], [0], [0], [1], [0, 0, 1, 1], [], []>} : vector<128x128xbf16>, vector<128x128xbf16>, vector<128x128xf32> -> vector<128x128xf32>
    %7 = arith.addf %3, %6 : vector<128x128xf32>
    %c0_6 = arith.constant 0 : index
    %c0_7 = arith.constant 0 : index
    %8 = vector.load %arg6[%c0_6, %c0_7] : memref<128x128xf32, #tpu.memory_space<vmem>>, vector<128x128xf32>
    tpu.vector_store %arg6[%c0_6, %c0_7], %7 {strides = array<i32>} : memref<128x128xf32, #tpu.memory_space<vmem>>, vector<128x128xf32>,
    %c2_i32 = arith.constant 2 : i32
    %9 = arith.cmpi eq, %arg1, %c2_i32 : i32
    %10 = arith.extui %9 : i1 to i32
    %c0_i32_8 = arith.constant 0 : i32
    %11 = arith.cmpi ne, %10, %c0_i32_8 : i32
    scf.if %11 {
      %c0_9 = arith.constant 0 : index
      %c0_10 = arith.constant 0 : index
      %12 = vector.load %arg4[%c0_9, %c0_10] : memref<128x1xf32, #tpu.memory_space<vmem>>, vector<128x1xf32>
      %c0_11 = arith.constant 0 : index
      %c0_12 = arith.constant 0 : index
      %13 = vector.load %arg6[%c0_11, %c0_12] : memref<128x128xf32, #tpu.memory_space<vmem>>, vector<128x128xf32>
      %14 = vector.broadcast %12 : vector<128x1xf32> to vector<128x128xf32>
      %15 = arith.mulf %14, %13 : vector<128x128xf32>
      %c0_13 = arith.constant 0 : index
      %c0_14 = arith.constant 0 : index
      %16 = vector.load %arg5[%c0_13, %c0_14] : memref<128x128xf32, #tpu.memory_space<vmem>>, vector<128x128xf32>
      tpu.vector_store %arg5[%c0_13, %c0_14], %15 {strides = array<i32>} : memref<128x128xf32, #tpu.memory_space<vmem>>, vector<128x128xf32>,
    } else {
    }
    return
  }
  func.func @transform_0(%arg0: i32, %arg1: i32) -> (i32, i32) {
    %c0_i32 = arith.constant 0 : i32
    return %arg0, %arg1 : i32, i32
  }
  func.func @transform_1(%arg0: i32, %arg1: i32) -> (i32, i32) {
    %c0_i32 = arith.constant 0 : i32
    %c0_i32_0 = arith.constant 0 : i32
    return %arg1, %c0_i32 : i32, i32
  }
  func.func @transform_2(%arg0: i32, %arg1: i32) -> (i32, i32) {
    %c0_i32 = arith.constant 0 : i32
    %c0_i32_0 = arith.constant 0 : i32
    return %arg0, %c0_i32 : i32, i32
  }
  func.func @transform_3(%arg0: i32, %arg1: i32) -> (i32, i32) {
    %c0_i32 = arith.constant 0 : i32
    %c0_i32_0 = arith.constant 0 : i32
    return %arg0, %c0_i32 : i32, i32
  }
}

</mosaic_0001>

<bundles_post_ra>
// kernel: tpu_custom_call.1
= control target key start
LH: loop header
LB: loop body
LE: loop exit
PB: predicated region body
PF: predicated region fallthrough
CT: control target
= control target key end

     0   :  { %8 = vsyncpa [#allocation4], 0  ;;  %s1489_s0 = inlined_call_operand.hbm [shape: bf16[384,384], index: 0, kind: input, shape index: {}]   ;;  %s1490_s1 = inlined_call_operand.vmem [shape: bf16[384,128], index: 1, kind: input, shape index: {}]   ;;  %s1491_s2 = inlined_call_operand.vmem [shape: f32[384,1], index: 2, kind: input, shape index: {}]   ;;  %s1492_s3 = inlined_call_operand.hbm [shape: f32[384,128], index: 3, kind: output, shape index: {}]  }
   0x1   :  { %10 = vsyncpa [#allocation4 + $0x1], 0 }
   0x2   :  { %11 = vsyncpa [#allocation5], 0 }
   0x3   :  { %13 = vsyncpa [#allocation5 + $0x1], 0  ;;  %s1227_s12 = smov 0   ;;  %s1229_s13 = smov 0  }
   0x4   :  { %s1231_s14 = smov 0   ;;  %s1233_s15 = smov 0  }
   0x5   :  { %s1235_s16 = smov 0   ;;  %s1237_s17 = smov 0  }
   0x6   :  { %s1239_s18 = smov 0   ;;  %s1241_s19 = smov 0  }
   0x7   :  { %s1243_s20 = smov 0   ;;  %s1245_s21 = smov 0  }
   0x8   :  { %s1247_s22 = smov 0  }
   0x9 LB: > { %1496 = sst [smem:[#allocation9_spill]] %s1176_s17  ;;  %s817_s23 = sadd.s32 4294967295, %s1196_s22   ;;  %s1196_s22 = sphi %s1247_s22, %s19_s22   ;;  %s1192_s21 = sphi %s1245_s21, %s1517_s21   ;;  %s1188_s20 = sphi %s1243_s20, %s1516_s20   ;;  %s1184_s19 = sphi %s1241_s19, %s1515_s19   ;;  %s1180_s18 = sphi %s1239_s18, %s1514_s18   ;;  %s1176_s17 = sphi %s1237_s17, %s1506_s17   ;;  %s1172_s16 = sphi %s1235_s16, %s1513_s16   ;;  %s1168_s15 = sphi %s1233_s15, %s1512_s15   ;;  %s1164_s14 = sphi %s1231_s14, %s1511_s14   ;;  %s1160_s13 = sphi %s1229_s13, %s1510_s13   ;;  %s1156_s12 = sphi %s1227_s12, %s1509_s12  }
   0xa   : > { %s818_s24 = sadd.s32 4294967294, %s1196_s22   ;;  %s28_s25 = sadd.s32 1, %s1188_s20 }
   0xb   : > { %s31_s26 = sadd.s32 1, %s1192_s21  ;;  %p29_p0 = scmp.ge.s32.totalorder %s28_s25, 3 }
   0xc   : > { %s40_s27 = sadd.s32 1, %s1176_s17  ;;  %p47_p1 = scmp.ne.s32.totalorder %s1176_s17, %s1172_s16 }
   0xd   : > { %p48_p2 = scmp.eq.s32.totalorder %s1196_s22, 0  ;;  %s1519_s25 = smov (%p29_p0, %s28_s25), 0 }
   0xe   : > { %1497 = sst [smem:[#allocation10_spill]] %s1519_s25  ;;  %s1521_s26 = smov (!%p29_p0, %s31_s26), %s1192_s21 }
   0xf   : > { %s36_s28 = ssub.s32 %s1188_s20, %s1519_s25  ;;  %p1293_p3 = por %p48_p2, %p47_p1 }
  0x10   : > { %p33_p4 = scmp.ge.s32.totalorder %s1521_s26, 3  ;;  %p53_p5 = scmp.ne.s32.totalorder %s1172_s16, %s1168_s15 }
  0x11   : > { %p54_p6 = scmp.eq.s32.totalorder %s817_s23, 0  ;;  %s118_s30 = sadd.s32 1, %s1164_s14 }
  0x12   : > { %s1523_s26 = smov (%p33_p4, %s1521_s26), 0  ;;  %p128_p8 = scmp.ne.s32.totalorder %s1164_s14, %s1160_s13 }
  0x13   : > { %1499 = sst [smem:[#allocation11_spill]] %s1523_s26  ;;  %p1301_p7 = por %p54_p6, %p53_p5 }
  0x14   : > { %s35_s5 = ssub.s32 %s1192_s21, %s1523_s26  ;;  %p129_p9 = scmp.eq.s32.totalorder %s817_s23, 8 }
  0x15   : > { %s37_s6 = sor.u32 %s36_s28, %s35_s5  ;;  %p116_p10 = scmp.eq.s32.totalorder %s35_s5, 0 }
  0x16   : > { %p38_p11 = scmp.eq.s32.totalorder %s37_s6, 0  ;;  %p1309_p12 = por %p129_p9, %p128_p8 }
  0x17   : > { %s1314_s8 = scalar_select %p116_p10, %s1164_s14, %s118_s30  }
  0x18   : > { %s1317_s9 = scalar_select %p38_p11, %s1176_s17, %s40_s27  }
  0x19   : > { %p134_p13 = scmp.ne.s32.totalorder %s1160_s13, %s1156_s12  ;;  %p135_p0 = scmp.eq.s32.totalorder %s818_s24, 8 }
  0x1a   : > { %1502 = sst [smem:[#allocation12_spill]] %s1317_s9  ;;  %p933_p1 = scmp.lt.s32.totalorder %s1196_s22, 9 }
  0x1b   : > { %p1322_p2 = por %p135_p0, %p134_p13  ;;  %s155_s11 = sand.u32 1, %s1176_s17  }
  0x1c   : > { %s821_s15 = sshll.u32 %s155_s11, 6  ;;  %s920_s23 = smul.u32 48, %s1192_s21 }
  0x1d   : > { %s159_s28 = scalar_lea.vmem [#allocation3], %s821_s15  ;;  %p1330_p4 = pnand %p933_p1, %p1293_p3 }
  0x1e   : > { %s168_s5 = sshll.u32 %s159_s28, 4  ;;  %s165_s27 = sadd.s32 %s1188_s20, %s920_s23  ;;  %s169_s5 = int_to_ptr.vmem [resolvable:$true] %s168_s5 }
  0x1f   : > { %s824_s30 = sshll.u32 %s165_s27, 6  ;;  %s156_s9 = scalar_lea.sflag [#allocation4], %s155_s11 }
  0x20   : > { %s167_s25 = scalar_lea.hbm %s1489_s0, %s824_s30  ;;  %p1050_p5 = pneg %p1330_p4 }
  0x21   : > { %s1061_s17 = scalar_lea.vmem %s169_s5, 1024  ;;  %s1198_s29 = smov [#allocation3]  }
  0x22   : > { %p1062_p6 = scmp.ne.s32.totalorder %s169_s5, %s1061_s17  ;;  %s1066_s15 = sshll.u32 %s1198_s29, 4  ;;  %s1067_s15 = int_to_ptr.vmem [resolvable:$false] %s1066_s15 }
  0x23   : > { %s1068_s28 = scalar_lea.vmem %s1067_s15, 2048  ;;  %p1069_p3 = scmp.lt.s32.totalorder %s169_s5, %s1067_s15 }
  0x24   : > { %p1064_p8 = pnand %p1062_p6, %p1050_p5  ;;  %p1070_p10 = scmp.lt.s32.totalorder %s1068_s28, %s1061_s17 }
  0x26   : > { %p1065_p9 = pneg %p1064_p8  ;;  %p1071_p11 = por %p1070_p10, %p1069_p3 }
  0x28   : > { %p1072_p13 = pnand %p1071_p11, %p1065_p9 }
  0x2a   : > { %1075 = shalt.err (!%p1072_p13)
}
  0x2b   : > { %s1199_s23 = smov 192   ;;  %s1200_s26 = smov 64  }
  0x2c   : > { %s1201_s11 = smov 4   ;;  %p825_p0 = scmp.ge.s32.totalorder %s1196_s22, 1 }
  0x2d   : > { %928 = dma.hbm_to_vmem [thread:$0]  (!%p1330_p4), %s167_s25, 1024, %s169_s5, %s156_s9, %s1199_s23, %s1200_s26, %s1201_s11  }
  0x2e   : > { %p194_p1 = scmp.lt.s32.totalorder %s1196_s22, 10 }
  0x30   : > { %p195_p5 = pnand %p825_p0, %p194_p1 }
  0x31   : > { %s200_s27 = sand.u32 (!%p195_p5), 1, %s1172_s16  }
  0x32   : > { %198 = sbr.rel (%p195_p5) target bundleno = 500 (0x1f4), region = 32  ;;  %s826_s30 = sshll.u32 (!%p195_p5), %s200_s27, 6 }
  0x33   : > { %s201_s17 = scalar_lea.sflag (!%p195_p5), [#allocation4], %s200_s27  ;;  %s1345_s24 = scalar_lea.vmem (!%p195_p5), [#allocation3], %s826_s30 }
  0x37   : > { %1147 = dma.done.wait (%p1301_p7), %s201_s17, 1024  }
  0x38   : > { %1149 = vsyncadd (%p1301_p7), %s201_s17, 4294966272  ;;  %s234_s25 = sand.u32 1, %s1160_s13   ;;  %s828_s9 = sshll.u32 %s1180_s18, 4 }
  0x39   : > { %s827_s5 = sshll.u32 %s234_s25, 7  ;;  %p239_p4 = scmp.lt.s32.totalorder %s828_s9, 47 }
  0x3a   : > { %s830_s6 = sshll.u32 %s1184_s19, 4  ;;  %s1366_s30 = scalar_lea.vmem [#allocation6], %s827_s5 }
  0x3b   : > { %s1525_s9 = smov (!%p239_p4, %s828_s9), 47  ;;  %p245_p6 = scmp.lt.s32.totalorder %s830_s6, 47 }
  0x3c   : > { %s829_s29 = sshll.u32 %s1525_s9, 2  ;;  %p832_p7 = scmp.ne.s32.totalorder %s1180_s18, 0 }
  0x3d   : > { %s1359_s23 = scalar_lea.vmem %s1490_s1, %s829_s29  ;;  %s1527_s6 = smov (!%p245_p6, %s830_s6), 47 }
  0x3e   : > { %s831_s4 = sshll.u32 %s1527_s6, 3  ;;  %255 = sbr.rel (%p832_p7) target bundleno = 76 (0x4c), region = 40 }
  0x3f   : > { %s1364_s27 = scalar_lea.vmem %s1491_s2, %s831_s4 }
  0x43   : > { %v1202_v0 = vmov 0.0  }
  0x44   : > { %256 = vst [vmem:[#allocation2 + $0x30] sm:$0xff] %v1202_v0  ;;  %257 = vst [vmem:[#allocation2] sm:$0xff] %v1202_v0 }
  0x45   : > { %258 = vst [vmem:[#allocation2 + $0x58] sm:$0xff] %v1202_v0  ;;  %259 = vst [vmem:[#allocation2 + $0x18] sm:$0xff] %v1202_v0 }
  0x46   : > { %260 = vst [vmem:[#allocation2 + $0x50] sm:$0xff] %v1202_v0  ;;  %261 = vst [vmem:[#allocation2 + $0x68] sm:$0xff] %v1202_v0 }
  0x47   : > { %262 = vst [vmem:[#allocation2 + $0x8] sm:$0xff] %v1202_v0  ;;  %263 = vst [vmem:[#allocation2 + $0x48] sm:$0xff] %v1202_v0 }
  0x48   : > { %264 = vst [vmem:[#allocation2 + $0x40] sm:$0xff] %v1202_v0  ;;  %265 = vst [vmem:[#allocation2 + $0x20] sm:$0xff] %v1202_v0 }
  0x49   : > { %266 = vst [vmem:[#allocation2 + $0x10] sm:$0xff] %v1202_v0  ;;  %267 = vst [vmem:[#allocation2 + $0x38] sm:$0xff] %v1202_v0 }
  0x4a   : > { %268 = vst [vmem:[#allocation2 + $0x60] sm:$0xff] %v1202_v0  ;;  %269 = vst [vmem:[#allocation2 + $0x70] sm:$0xff] %v1202_v0 }
  0x4b   : > { %270 = vst [vmem:[#allocation2 + $0x78] sm:$0xff] %v1202_v0  ;;  %271 = vst [vmem:[#allocation2 + $0x28] sm:$0xff] %v1202_v0 }
  0x4c PF: > { %v1030_v1 = vld [vmem:[%s1359_s23 + $0x38] sm:$0xff]   ;;  %v1031_v2 = vld [vmem:[%s1359_s23 + $0x30] sm:$0xff]   ;;  %v1032_v3 = vld [vmem:[%s1359_s23 + $0x28] sm:$0xff]   ;;  %p849_p8 = scmp.ne.s32.totalorder %s1180_s18, 2 }
  0x4d   : > { %872 = vmatprep.subr.bf16.mxu0 %v1030_v1  ;;  %904 = vmatprep.subr.bf16.mxu1 %v1030_v1  ;;  %v1033_v4 = vld [vmem:[%s1359_s23 + $0x20] sm:$0xff]   ;;  %v1034_v7 = vld [vmem:[%s1359_s23 + $0x18] sm:$0xff]   ;;  %v1035_v8 = vld [vmem:[%s1359_s23 + $0x10] sm:$0xff]  }
  0x4e   : > { %873 = vmatpush3.bf16.msra.mxu0 %v1030_v1  ;;  %912 = vmatpush3.bf16.msra.mxu1 %v1030_v1  ;;  %v1038_v5 = vld [vmem:[%s1345_s24] sm:$0xff]   ;;  %v1036_v9 = vld [vmem:[%s1359_s23 + $0x8] sm:$0xff]   ;;  %v1042_v13 = vld [vmem:[%s1345_s24 + $0x10] sm:$0xff]  }
  0x4f   : > { %874 = vmatprep.subr.bf16.mxu0 %v1031_v2  ;;  %905 = vmatprep.subr.bf16.mxu1 %v1031_v2  ;;  %v1039_v6 = vld [vmem:[%s1345_s24 + $0x20] sm:$0xff]   ;;  %v1040_v11 = vld [vmem:[%s1345_s24 + $0x8] sm:$0xff]   ;;  %v1043_v14 = vld [vmem:[%s1345_s24 + $0x30] sm:$0xff]  }
  0x50   : > { %888 = vmatprep.mubr.bf16.mxu0 %v1038_v5  ;;  %896 = vmatprep.mubr.bf16.mxu1 %v1039_v6  ;;  %v1037_v10 = vld [vmem:[%s1359_s23] sm:$0xff]   ;;  %v1041_v12 = vld [vmem:[%s1345_s24 + $0x28] sm:$0xff]   ;;  %v1044_v15 = vld [vmem:[%s1345_s24 + $0x18] sm:$0xff]  }
  0x51   : > { %v1045_v16 = vld [vmem:[%s1345_s24 + $0x38] sm:$0xff]   ;;  %v282_v18 = vld [vmem:[#allocation2 + $0x10] sm:$0xff]  ;;  %v280_v22 = vld [vmem:[#allocation2 + $0x40] sm:$0xff] }
  0x52   : > { %875 = vmatpush3.bf16.msra.mxu0 %v1031_v2  ;;  %913 = vmatpush3.bf16.msra.mxu1 %v1031_v2  ;;  %v274_v17 = vld [vmem:[#allocation2 + $0x58] sm:$0xff]  ;;  %v272_v21 = vld [vmem:[#allocation2 + $0x30] sm:$0xff]  ;;  %v273_v33 = vld [vmem:[#allocation2] sm:$0xff] }
  0x53   : > { %876 = vmatprep.subr.bf16.mxu0 %v1032_v3  ;;  %906 = vmatprep.subr.bf16.mxu1 %v1032_v3  ;;  %v275_v27 = vld [vmem:[#allocation2 + $0x18] sm:$0xff]  ;;  %v281_v34 = vld [vmem:[#allocation2 + $0x20] sm:$0xff]  ;;  %v278_v39 = vld [vmem:[#allocation2 + $0x8] sm:$0xff] }
  0x54   : > { %v283_v28 = vld [vmem:[#allocation2 + $0x38] sm:$0xff]  ;;  %v276_v45 = vld [vmem:[#allocation2 + $0x50] sm:$0xff]  ;;  %v284_v46 = vld [vmem:[#allocation2 + $0x60] sm:$0xff] }
  0x55   : > { %v286_v40 = vld [vmem:[#allocation2 + $0x78] sm:$0xff]  ;;  %v279_v51 = vld [vmem:[#allocation2 + $0x48] sm:$0xff]  ;;  %v285_v58 = vld [vmem:[#allocation2 + $0x70] sm:$0xff] }
  0x56   : > { %877 = vmatpush3.bf16.msra.mxu0 %v1032_v3  ;;  %914 = vmatpush3.bf16.msra.mxu1 %v1032_v3  ;;  %v287_v52 = vld [vmem:[#allocation2 + $0x28] sm:$0xff] }
  0x57   : > { %878 = vmatprep.subr.bf16.mxu0 %v1033_v4  ;;  %907 = vmatprep.subr.bf16.mxu1 %v1033_v4  ;;  %v277_v57 = vld [vmem:[#allocation2 + $0x68] sm:$0xff] }
  0x5a   : > { %879 = vmatpush3.bf16.msra.mxu0 %v1033_v4  ;;  %915 = vmatpush3.bf16.msra.mxu1 %v1033_v4 }
  0x5b   : > { %880 = vmatprep.subr.bf16.mxu0 %v1034_v7  ;;  %908 = vmatprep.subr.bf16.mxu1 %v1034_v7 }
  0x5e   : > { %881 = vmatpush3.bf16.msra.mxu0 %v1034_v7  ;;  %916 = vmatpush3.bf16.msra.mxu1 %v1034_v7 }
  0x5f   : > { %882 = vmatprep.subr.bf16.mxu0 %v1035_v8  ;;  %909 = vmatprep.subr.bf16.mxu1 %v1035_v8 }
  0x62   : > { %883 = vmatpush3.bf16.msra.mxu0 %v1035_v8  ;;  %917 = vmatpush3.bf16.msra.mxu1 %v1035_v8 }
  0x63   : > { %884 = vmatprep.subr.bf16.mxu0 %v1036_v9  ;;  %910 = vmatprep.subr.bf16.mxu1 %v1036_v9 }
  0x66   : > { %885 = vmatpush3.bf16.msra.mxu0 %v1036_v9  ;;  %918 = vmatpush3.bf16.msra.mxu1 %v1036_v9 }
  0x67   : > { %886 = vmatprep.subr.bf16.mxu0 %v1037_v10  ;;  %911 = vmatprep.subr.bf16.mxu1 %v1037_v10 }
  0x6a   : > { %887 = vmatpush3.bf16.msra.mxu0 %v1037_v10  ;;  %919 = vmatpush3.bf16.msra.mxu1 %v1037_v10 }
  0x6d   : > { %889 = vmatmul.mubr.bf16.vlgmr.msra.gmra.mxu0 %v1040_v11  ;;  %897 = vmatmul.mubr.bf16.vlgmr.msra.gmra.mxu1 %v1041_v12 }
  0x6e   : > { %892 = vmatprep.mubr.bf16.mxu0 %v1042_v13  ;;  %900 = vmatprep.mubr.bf16.mxu1 %v1043_v14 }
  0x75   : > { %893 = vmatmul.mubr.bf16.gmra.mxu0 %v1044_v15  ;;  %901 = vmatmul.mubr.bf16.gmra.mxu1 %v1045_v16 }
 0x12d   : > { %v890_v19 = vpop.f32.mrf.mxu0  ;;  %v898_v20 = vpop.f32.mrf.mxu1 }
 0x12e   : > { %v515_v23 = vadd.f32 %v890_v19, %v274_v17  ;;  %v523_v24 = vadd.f32 %v898_v20, %v282_v18 }
 0x12f   : > { %v450_v25 = vpop.f32.mrf.mxu0  ;;  %v482_v26 = vpop.f32.mrf.mxu1 }
 0x130   : > { %531 = vst [vmem:[#allocation2 + $0x58] sm:$0xff] %v515_v23  ;;  %539 = vst [vmem:[#allocation2 + $0x10] sm:$0xff] %v523_v24  ;;  %v513_v29 = vadd.f32 %v450_v25, %v272_v21  ;;  %v521_v30 = vadd.f32 %v482_v26, %v280_v22 }
 0x131   : > { %v891_v31 = vpop.f32.mrf.mxu0  ;;  %v899_v32 = vpop.f32.mrf.mxu1 }
 0x132   : > { %529 = vst [vmem:[#allocation2 + $0x30] sm:$0xff] %v513_v29  ;;  %537 = vst [vmem:[#allocation2 + $0x40] sm:$0xff] %v521_v30  ;;  %v516_v35 = vadd.f32 %v891_v31, %v275_v27  ;;  %v524_v36 = vadd.f32 %v899_v32, %v283_v28 }
 0x133   : > { %v453_v37 = vpop.f32.mrf.mxu0  ;;  %v485_v38 = vpop.f32.mrf.mxu1 }
 0x134   : > { %532 = vst [vmem:[#allocation2 + $0x18] sm:$0xff] %v516_v35  ;;  %540 = vst [vmem:[#allocation2 + $0x38] sm:$0xff] %v524_v36  ;;  %v514_v41 = vadd.f32 %v453_v37, %v273_v33  ;;  %v522_v42 = vadd.f32 %v485_v38, %v281_v34 }
 0x135   : > { %v894_v43 = vpop.f32.mrf.mxu0  ;;  %v902_v44 = vpop.f32.mrf.mxu1 }
 0x136   : > { %530 = vst [vmem:[#allocation2] sm:$0xff] %v514_v41  ;;  %538 = vst [vmem:[#allocation2 + $0x20] sm:$0xff] %v522_v42  ;;  %v519_v47 = vadd.f32 %v894_v43, %v278_v39  ;;  %v527_v48 = vadd.f32 %v902_v44, %v286_v40 }
 0x137   : > { %v466_v49 = vpop.f32.mrf.mxu0  ;;  %v498_v50 = vpop.f32.mrf.mxu1 }
 0x138   : > { %535 = vst [vmem:[#allocation2 + $0x8] sm:$0xff] %v519_v47  ;;  %543 = vst [vmem:[#allocation2 + $0x78] sm:$0xff] %v527_v48  ;;  %v517_v53 = vadd.f32 %v466_v49, %v276_v45  ;;  %v525_v54 = vadd.f32 %v498_v50, %v284_v46 }
 0x139   : > { %v895_v55 = vpop.f32.mrf.mxu0  ;;  %v903_v56 = vpop.f32.mrf.mxu1 }
 0x13a   : > { %533 = vst [vmem:[#allocation2 + $0x50] sm:$0xff] %v517_v53  ;;  %541 = vst [vmem:[#allocation2 + $0x60] sm:$0xff] %v525_v54  ;;  %v520_v59 = vadd.f32 %v895_v55, %v279_v51  ;;  %v528_v60 = vadd.f32 %v903_v56, %v287_v52  ;;  %548 = sbr.rel (%p849_p8) target bundleno = 476 (0x1dc), region = 44 }
 0x13b   : > { %v469_v61 = vpop.f32.mrf.mxu0  ;;  %v501_v62 = vpop.f32.mrf.mxu1 }
 0x13c   : > { %536 = vst [vmem:[#allocation2 + $0x48] sm:$0xff] %v520_v59  ;;  %544 = vst [vmem:[#allocation2 + $0x28] sm:$0xff] %v528_v60  ;;  %v518_v63 = vadd.f32 %v469_v61, %v277_v57  ;;  %v526_v0 = vadd.f32 %v501_v62, %v285_v58 }
 0x13e   : > { %534 = vst [vmem:[#allocation2 + $0x68] sm:$0xff] %v518_v63  ;;  %542 = vst [vmem:[#allocation2 + $0x70] sm:$0xff] %v526_v0 }
 0x13f   : > { %v551_v1 = vld [vmem:[%s1364_s27 + $0x10] sm:$0xff]  ;;  %v549_v2 = vld [vmem:[%s1364_s27] sm:$0xff]  ;;  %v1203_v3 = vmov 0   ;;  %v552_v4 = vld [vmem:[%s1364_s27 + $0x18] sm:$0xff] }
 0x140   : > { %1047 = vset.pattern.permute.xlu1 %v1203_v3  ;;  %1046 = vset.pattern.permute.xlu0 %v1203_v3  ;;  %v550_v5 = vld [vmem:[%s1364_s27 + $0x8] sm:$0xff]  ;;  %v553_v7 = vld [vmem:[%s1364_s27 + $0x20] sm:$0xff]  ;;  %v556_v8 = vld [vmem:[%s1364_s27 + $0x38] sm:$0xff] }
 0x141   : > { %593 = vperm.xlu1 %1047, %v551_v1   ;;  %583 = vperm.xlu0 %1046, %v549_v2   ;;  %v554_v6 = vld [vmem:[%s1364_s27 + $0x28] sm:$0xff]  ;;  %v555_v9 = vld [vmem:[%s1364_s27 + $0x30] sm:$0xff]  ;;  %v557_v11 = vld [vmem:[%s1364_s27 + $0x40] sm:$0xff] }
 0x142   : > { %v558_v10 = vld [vmem:[%s1364_s27 + $0x48] sm:$0xff]  ;;  %v560_v12 = vld [vmem:[%s1364_s27 + $0x58] sm:$0xff]  ;;  %v559_v13 = vld [vmem:[%s1364_s27 + $0x50] sm:$0xff] }
 0x143   : > { %v562_v14 = vld [vmem:[%s1364_s27 + $0x68] sm:$0xff]  ;;  %v561_v15 = vld [vmem:[%s1364_s27 + $0x60] sm:$0xff]  ;;  %v564_v16 = vld [vmem:[%s1364_s27 + $0x78] sm:$0xff] }
 0x144   : > { %v563_v17 = vld [vmem:[%s1364_s27 + $0x70] sm:$0xff]  ;;  %v567_v18 = vld [vmem:[#allocation2 + $0x58] sm:$0xff]  ;;  %v566_v25 = vld [vmem:[#allocation2] sm:$0xff] }
 0x145   : > { %598 = vperm.xlu1 %1047, %v552_v4   ;;  %588 = vperm.xlu0 %1046, %v550_v5   ;;  %v565_v19 = vld [vmem:[#allocation2 + $0x30] sm:$0xff]  ;;  %v568_v24 = vld [vmem:[#allocation2 + $0x18] sm:$0xff]  ;;  %v570_v30 = vld [vmem:[#allocation2 + $0x68] sm:$0xff] }
 0x146   : > { %v569_v31 = vld [vmem:[#allocation2 + $0x50] sm:$0xff]  ;;  %v572_v36 = vld [vmem:[#allocation2 + $0x48] sm:$0xff]  ;;  %v574_v42 = vld [vmem:[#allocation2 + $0x20] sm:$0xff] }
 0x147   : > { %v571_v37 = vld [vmem:[#allocation2 + $0x8] sm:$0xff]  ;;  %v573_v43 = vld [vmem:[#allocation2 + $0x40] sm:$0xff]  ;;  %v576_v48 = vld [vmem:[#allocation2 + $0x38] sm:$0xff] }
 0x148   : > { %v575_v49 = vld [vmem:[#allocation2 + $0x10] sm:$0xff]  ;;  %v577_v55 = vld [vmem:[#allocation2 + $0x60] sm:$0xff]  ;;  %v580_v60 = vld [vmem:[#allocation2 + $0x28] sm:$0xff] }
 0x149   : > { %608 = vperm.xlu1 %1047, %v554_v6   ;;  %603 = vperm.xlu0 %1046, %v553_v7   ;;  %v578_v54 = vld [vmem:[#allocation2 + $0x70] sm:$0xff]  ;;  %v579_v61 = vld [vmem:[#allocation2 + $0x78] sm:$0xff] }
 0x14d   : > { %618 = vperm.xlu1 %1047, %v556_v8   ;;  %613 = vperm.xlu0 %1046, %v555_v9  }
 0x151   : > { %628 = vperm.xlu1 %1047, %v558_v10   ;;  %623 = vperm.xlu0 %1046, %v557_v11  }
 0x155   : > { %638 = vperm.xlu1 %1047, %v560_v12   ;;  %633 = vperm.xlu0 %1046, %v559_v13  }
 0x159   : > { %648 = vperm.xlu1 %1047, %v562_v14   ;;  %643 = vperm.xlu0 %1046, %v561_v15  }
 0x15d   : > { %658 = vperm.xlu1 %1047, %v564_v16   ;;  %653 = vperm.xlu0 %1046, %v563_v17  }
 0x1bc   : > { %v594_v20 = vpop.permute.xlu1 %593  ;;  %v584_v21 = vpop.permute.xlu0 %583 }
 0x1bd   : > { %v663_v22 = vmul.f32 %v594_v20, %v567_v18  ;;  %v661_v23 = vmul.f32 %v584_v21, %v565_v19 }
 0x1bf   : > { %679 = vst [vmem:[%s1366_s30 + $0x10] sm:$0xff] %v663_v22  ;;  %677 = vst [vmem:[%s1366_s30] sm:$0xff] %v661_v23 }
 0x1c0   : > { %v599_v26 = vpop.permute.xlu1 %598  ;;  %v589_v27 = vpop.permute.xlu0 %588 }
 0x1c1   : > { %v664_v28 = vmul.f32 %v599_v26, %v568_v24  ;;  %v662_v29 = vmul.f32 %v589_v27, %v566_v25 }
 0x1c3   : > { %680 = vst [vmem:[%s1366_s30 + $0x18] sm:$0xff] %v664_v28  ;;  %678 = vst [vmem:[%s1366_s30 + $0x8] sm:$0xff] %v662_v29 }
 0x1c4   : > { %v609_v32 = vpop.permute.xlu1 %608  ;;  %v604_v33 = vpop.permute.xlu0 %603 }
 0x1c5   : > { %v666_v34 = vmul.f32 %v609_v32, %v570_v30  ;;  %v665_v35 = vmul.f32 %v604_v33, %v569_v31 }
 0x1c7   : > { %682 = vst [vmem:[%s1366_s30 + $0x28] sm:$0xff] %v666_v34  ;;  %681 = vst [vmem:[%s1366_s30 + $0x20] sm:$0xff] %v665_v35 }
 0x1c8   : > { %v619_v38 = vpop.permute.xlu1 %618  ;;  %v614_v39 = vpop.permute.xlu0 %613 }
 0x1c9   : > { %v668_v40 = vmul.f32 %v619_v38, %v572_v36  ;;  %v667_v41 = vmul.f32 %v614_v39, %v571_v37 }
 0x1cb   : > { %684 = vst [vmem:[%s1366_s30 + $0x38] sm:$0xff] %v668_v40  ;;  %683 = vst [vmem:[%s1366_s30 + $0x30] sm:$0xff] %v667_v41 }
 0x1cc   : > { %v629_v44 = vpop.permute.xlu1 %628  ;;  %v624_v45 = vpop.permute.xlu0 %623 }
 0x1cd   : > { %v670_v46 = vmul.f32 %v629_v44, %v574_v42  ;;  %v669_v47 = vmul.f32 %v624_v45, %v573_v43 }
 0x1cf   : > { %686 = vst [vmem:[%s1366_s30 + $0x48] sm:$0xff] %v670_v46  ;;  %685 = vst [vmem:[%s1366_s30 + $0x40] sm:$0xff] %v669_v47 }
 0x1d0   : > { %v639_v50 = vpop.permute.xlu1 %638  ;;  %v634_v51 = vpop.permute.xlu0 %633 }
 0x1d1   : > { %v672_v52 = vmul.f32 %v639_v50, %v576_v48  ;;  %v671_v53 = vmul.f32 %v634_v51, %v575_v49 }
 0x1d3   : > { %688 = vst [vmem:[%s1366_s30 + $0x58] sm:$0xff] %v672_v52  ;;  %687 = vst [vmem:[%s1366_s30 + $0x50] sm:$0xff] %v671_v53 }
 0x1d4   : > { %v649_v56 = vpop.permute.xlu1 %648  ;;  %v644_v57 = vpop.permute.xlu0 %643 }
 0x1d5   : > { %v674_v58 = vmul.f32 %v649_v56, %v578_v54  ;;  %v673_v59 = vmul.f32 %v644_v57, %v577_v55 }
 0x1d7   : > { %690 = vst [vmem:[%s1366_s30 + $0x68] sm:$0xff] %v674_v58  ;;  %689 = vst [vmem:[%s1366_s30 + $0x60] sm:$0xff] %v673_v59 }
 0x1d8   : > { %v659_v62 = vpop.permute.xlu1 %658  ;;  %v654_v63 = vpop.permute.xlu0 %653 }
 0x1d9   : > { %v676_v0 = vmul.f32 %v659_v62, %v580_v60  ;;  %v675_v1 = vmul.f32 %v654_v63, %v579_v61 }
 0x1db   : > { %692 = vst [vmem:[%s1366_s30 + $0x78] sm:$0xff] %v676_v0  ;;  %691 = vst [vmem:[%s1366_s30 + $0x70] sm:$0xff] %v675_v1 }
 0x1dc PF: > { %s855_s18 = sshll.u32 %s1184_s19, 11  ;;  %s707_s5 = sshll.u32 %s1366_s30, 4  ;;  %s1425_s5 = int_to_ptr.vmem [resolvable:$true] %s707_s5 }
 0x1dd   : > { %s1422_s9 = scalar_lea.hbm %s1492_s3, %s855_s18  ;;  %s1429_s6 = scalar_lea.sflag [#allocation5], %s234_s25 }
 0x1de   : > { %s1076_s29 = scalar_lea.vmem %s1425_s5, 2048  ;;  %s1204_s19 = smov [#allocation6]  }
 0x1df   : > { %p1077_p9 = scmp.ne.s32.totalorder %s1425_s5, %s1076_s29  ;;  %s1080_s15 = sshll.u32 %s1204_s19, 4  ;;  %s1081_s15 = int_to_ptr.vmem [resolvable:$false] %s1080_s15 }
 0x1e0   : > { %s1082_s28 = scalar_lea.vmem %s1081_s15, 4096  ;;  %p1083_p11 = scmp.lt.s32.totalorder %s1425_s5, %s1081_s15 }
 0x1e1   : > { %p1078_p3 = pnand %p1077_p9, %p1309_p12  ;;  %p1084_p13 = scmp.lt.s32.totalorder %s1082_s28, %s1076_s29 }
 0x1e3   : > { %p1079_p10 = pneg %p1078_p3  ;;  %p1085_p0 = por %p1084_p13, %p1083_p11 }
 0x1e5   : > { %p1086_p1 = pnand %p1085_p0, %p1079_p10 }
 0x1e7   : > { %1089 = shalt.err (!%p1086_p1)
}
 0x1e8   : > { %s1090_s25 = scalar_lea.hbm %s1422_s9, 2048  ;;  %s1094_s26 = scalar_lea.hbm %s1492_s3, 6144 }
 0x1e9   : > { %p1091_p5 = scmp.ne.s32.totalorder %s1422_s9, %s1090_s25  ;;  %p1095_p7 = scmp.lt.s32.totalorder %s1422_s9, %s1492_s3 }
 0x1ea   : > { %p1096_p8 = scmp.lt.s32.totalorder %s1094_s26, %s1090_s25 }
 0x1eb   : > { %p1092_p4 = pnand %p1091_p5, %p1309_p12 }
 0x1ec   : > { %p1097_p9 = por %p1096_p8, %p1095_p7 }
 0x1ed   : > { %p1093_p6 = pneg %p1092_p4 }
 0x1ef   : > { %p1098_p3 = pnand %p1097_p9, %p1093_p6 }
 0x1f1   : > { %1101 = shalt.err (!%p1098_p3)
}
 0x1f2   : > { %s1205_s30 = smov 128   ;;  %s1206_s18 = smov 8  }
 0x1f3   : > { %923 = dma.vmem_to_hbm [thread:$0]  (%p1309_p12), %s1425_s5, 2048, %s1422_s9, %s1429_s6, %s1205_s30, %s1205_s30, %s1206_s18  }
 0x1f4 PF: > { %p934_p10 = scmp.ge.s32.totalorder %s1196_s22, 2  ;;  %s722_s17 = sand.u32 1, %s1156_s12  }
 0x1f5   : > { %s723_s24 = scalar_lea.sflag [#allocation5], %s722_s17 }
 0x1f6   : > { %p930_p11 = pnand %p934_p10, %p1322_p2 }
 0x1f8   : > { %p931_p13 = pneg %p930_p11 }
 0x1fa   : > { %1151 = dma.done.wait (%p931_p13), %s723_s24, 2048  }
 0x1fb   : > { %1153 = vsyncadd (%p931_p13), %s723_s24, 4294965248  ;;  %s19_s22 = sadd.s32 1, %s1196_s22   ;;  %s1505_s7 = sld [smem:[#allocation9_spill]] }
 0x1fc   : > { %p16_p0 = scmp.ge.s32.totalorder %s19_s22, 11   ;;  %s1506_s17 = sld [smem:[#allocation12_spill]] }
 0x1fd   : > { %s1507_s9 = sld [smem:[#allocation10_spill]]  ;;  %s1509_s12 = smov %s1160_s13 }
 0x1fe   : > { %s1508_s5 = sld [smem:[#allocation11_spill]]  ;;  %s1510_s13 = smov %s1164_s14 }
 0x1ff   : > { %s1511_s14 = smov %s1314_s8  ;;  %s1512_s15 = smov %s1172_s16 }
 0x200   : > { %s1514_s18 = smov %s1188_s20  ;;  %s1515_s19 = smov %s1192_s21 }
 0x201   : > { %s1513_s16 = smov %s1505_s7  ;;  %18 = sbr.rel (!%p16_p0) target bundleno = 9 (0x9), region = 91 }
 0x203   : > { %s1516_s20 = smov %s1507_s9 }
 0x204   : > { %s1517_s21 = smov %s1508_s5 }
 0x206   :  { %728 = vsyncpa [#allocation4], 1 }
 0x207   :  { %730 = vsyncpa [#allocation4 + $0x1], 1 }
 0x208   :  { %731 = vsyncpa [#allocation5], 1 }
 0x209   :  { %733 = vsyncpa [#allocation5 + $0x1], 1 }

</bundles_post_ra>
